<compile_context>
chip_gen: v6e
topology: v6e:2x2x1
jax: 0.10.0
libtpu: 0.0.40
codegen_flags: <defaults>
</compile_context>

<pallas_src>
import functools

import jax
import jax.numpy as jnp
from jax.experimental import pallas as pl
from jax.experimental.pallas import tpu as pltpu


def _round_up(x: int, m: int) -> int:
    return (x + m - 1) // m * m


def _vmem_capacity_bytes() -> int:
    # Trace-time hardware query; fall back to the smallest per-TC capacity
    # across supported generations (v7x: 64 MiB) if unavailable.
    try:
        return int(pltpu.get_tpu_info().vmem_capacity_bytes)
    except Exception:
        return 64 << 20


def _expert_kernel(x_ref, w1_ref, b1_ref, w2_ref, b2_ref, o_ref, *, compute_dtype):
    # ---- First linear: [tm, n_in] @ [n_in, n_h], f32 accumulation on the MXU.
    x = x_ref[...]
    if x.dtype != compute_dtype:
        x = x.astype(compute_dtype)
    w1 = w1_ref[...]
    if w1.dtype != compute_dtype:
        w1 = w1.astype(compute_dtype)
    h = jnp.dot(x, w1, preferred_element_type=jnp.float32)
    h = h + b1_ref[...].astype(jnp.float32)

    # ---- Exact GELU (erf-based), matching torch.nn.GELU() default.
    # EUP/VPU slots have slack in both DMA-bound and MXU-bound regimes.
    h = 0.5 * h * (1.0 + jax.lax.erf(h * 0.7071067811865476))

    # ---- Dropout(p=0.0) is the identity -> nothing to do.

    # ---- Second linear: [tm, n_h] @ [n_h, n_out].
    if h.dtype != compute_dtype:
        h = h.astype(compute_dtype)
    w2 = w2_ref[...]
    if w2.dtype != compute_dtype:
        w2 = w2.astype(compute_dtype)
    y = jnp.dot(h, w2, preferred_element_type=jnp.float32)
    y = y + b2_ref[...].astype(jnp.float32)
    o_ref[...] = y.astype(o_ref.dtype)


@functools.partial(jax.jit,
                   static_argnames=("tile_m", "use_bf16_matmul", "out_dtype"))
def _expert_forward_impl(x, w1, b1, w2, b2, *, tile_m, use_bf16_matmul, out_dtype):
    n_input = x.shape[-1]
    n_hidden = w1.shape[1]
    n_output = w2.shape[1]
    lead_shape = x.shape[:-1]

    x2d = x.reshape(-1, n_input)
    n_tokens = x2d.shape[0]

    x_bytes = jnp.dtype(x.dtype).itemsize
    w_bytes = jnp.dtype(w1.dtype).itemsize
    out_bytes = jnp.dtype(out_dtype).itemsize

    # MXU operand precision.  f32 operands stay exact (multi-pass emulation);
    # bf16 operands (opt-in, or when the weights/inputs already are bf16) keep
    # f32 accumulation but use the native bf16 MXU path on v6e/v7x.
    if use_bf16_matmul or jnp.dtype(w1.dtype) == jnp.bfloat16 \
            or jnp.dtype(x.dtype) == jnp.bfloat16:
        compute_dtype = jnp.bfloat16
    else:
        compute_dtype = jnp.float32

    # -------- Adaptive token tile --------------------------------------------
    sublane = 8 if x_bytes >= 4 else 16
    tm = max(sublane, min(int(tile_m), _round_up(n_tokens, sublane)))
    tm = _round_up(tm, sublane)

    min_tm = 8 * sublane          # 64 rows (f32) / 128 rows (bf16) floor
    min_steps = 8                 # >= 4 pipeline steps per TC on 2-TC chips

    # Keep enough grid steps for double-buffering overlap on latency-sized
    # batches (and for megacore sharding on v7x).
    while tm > min_tm and pl.cdiv(n_tokens, tm) < min_steps:
        tm = _round_up(max(min_tm, tm // 2), sublane)

    # Fit the VMEM budget of the actual chip (64 MiB/TC on v7x).
    vmem_cap = _vmem_capacity_bytes()

    def vmem_need(tm_):
        return (
            2 * tm_ * n_input * x_bytes                       # x tile, dbl-buffered
            + 2 * tm_ * n_output * out_bytes                  # out tile, dbl-buffered
            + 2 * (n_input * n_hidden + n_hidden
                   + n_hidden * n_output + n_output) * w_bytes  # resident W/b blocks
            + 4 * tm_ * (n_hidden + n_output)                 # f32 intermediates
        )

    while tm > min_tm and vmem_need(tm) > int(0.7 * vmem_cap):
        tm = _round_up(max(min_tm, tm // 2), sublane)

    grid = (pl.cdiv(n_tokens, tm),)

    vmem_limit = int(min(max(vmem_need(tm) * 3 // 2 + (4 << 20), 32 << 20),
                         int(0.75 * vmem_cap)))

    # Advisory cost from the TRUE logical shapes (no padding).
    cost = pl.CostEstimate(
        flops=2 * n_tokens * (n_input * n_hidden + n_hidden * n_output),
        transcendentals=n_tokens * n_hidden,
        bytes_accessed=(n_tokens * n_input * x_bytes
                        + (n_input * n_hidden + n_hidden
                           + n_hidden * n_output + n_output) * w_bytes
                        + n_tokens * n_output * out_bytes),
    )

    b1_2d = b1.reshape(1, n_hidden)
    b2_2d = b2.reshape(1, n_output)

    kernel = functools.partial(_expert_kernel, compute_dtype=compute_dtype)

    out = pl.pallas_call(
        kernel,
        out_shape=jax.ShapeDtypeStruct((n_tokens, n_output), out_dtype),
        grid_spec=pltpu.PrefetchScalarGridSpec(
            num_scalar_prefetch=0,
            grid=grid,
            in_specs=[
                pl.BlockSpec((tm, n_input), lambda i: (i, 0)),      # x (streamed)
                pl.BlockSpec((n_input, n_hidden), lambda i: (0, 0)),  # W1 (constant)
                pl.BlockSpec((1, n_hidden), lambda i: (0, 0)),        # b1
                pl.BlockSpec((n_hidden, n_output), lambda i: (0, 0)),  # W2 (constant)
                pl.BlockSpec((1, n_output), lambda i: (0, 0)),        # b2
            ],
            out_specs=pl.BlockSpec((tm, n_output), lambda i: (i, 0)),
        ),
        compiler_params=pltpu.CompilerParams(
            dimension_semantics=("parallel",),
            vmem_limit_bytes=vmem_limit,
        ),
        cost_estimate=cost,
    )(x2d, w1, b1_2d, w2, b2_2d)

    return out.reshape(*lead_shape, n_output)


def expert_forward(x, w1, b1, w2, b2, *, tile_m=512, use_bf16_matmul=False,
                   out_dtype=None):
    """x: [..., n_input] -> [..., n_output].  Weights stored [in, out] (x @ W + b)."""
    if out_dtype is None:
        out_dtype = x.dtype
    return _expert_forward_impl(x, w1, b1, w2, b2, tile_m=int(tile_m),
                                use_bf16_matmul=bool(use_bf16_matmul),
                                out_dtype=jnp.dtype(out_dtype).type)


def init_expert_params(key, n_input, n_output, n_hidden=128, dtype=jnp.float32):
    """Deterministic init mirroring nn.Linear's uniform bounds; weights stored [in, out]."""
    k1, k2, k3, k4 = jax.random.split(key, 4)
    bound1 = 1.0 / jnp.sqrt(n_input)
    bound2 = 1.0 / jnp.sqrt(n_hidden)
    w1 = jax.random.uniform(k1, (n_input, n_hidden), dtype, -bound1, bound1)
    b1 = jax.random.uniform(k2, (n_hidden,), dtype, -bound1, bound1)
    w2 = jax.random.uniform(k3, (n_hidden, n_output), dtype, -bound2, bound2)
    b2 = jax.random.uniform(k4, (n_output,), dtype, -bound2, bound2)
    return w1, b1, w2, b2


if __name__ == "__main__":
    # Small shapes consistent with the module; 512 tokens -> adaptive tile
    # gives an 8-step grid (>=4 pipeline steps per TensorCore on 2-TC chips).
    batch, seq = 4, 128
    n_input, n_hidden, n_output = 32, 128, 32

    key = jax.random.PRNGKey(0)
    kx, kp = jax.random.split(key)

    x = jax.random.normal(kx, (batch, seq, n_input), dtype=jnp.float32)
    w1, b1, w2, b2 = init_expert_params(kp, n_input, n_output, n_hidden)

    y = expert_forward(x, w1, b1, w2, b2)
    y = jax.block_until_ready(y)

    # Pure-JAX reference (exact GELU, dropout=0 -> identity).
    h_ref = x.reshape(-1, n_input) @ w1 + b1
    h_ref = 0.5 * h_ref * (1.0 + jax.lax.erf(h_ref / jnp.sqrt(2.0)))
    y_ref = (h_ref @ w2 + b2).reshape(batch, seq, n_output)

    assert y.shape == (batch, seq, n_output)
    assert jnp.allclose(y, y_ref, atol=1e-5, rtol=1e-5)

    print("KERNEL_OK")
</pallas_src>

<mosaic_0001>
module attributes {stable_mosaic.version = 11 : i64} {
  func.func @_expert_kernel(%arg0: i32, %arg1: memref<64x32xf32, #tpu.memory_space<vmem>>, %arg2: memref<32x128xf32, #tpu.memory_space<vmem>>, %arg3: memref<1x128xf32, #tpu.memory_space<vmem>>, %arg4: memref<128x32xf32, #tpu.memory_space<vmem>>, %arg5: memref<1x32xf32, #tpu.memory_space<vmem>>, %arg6: memref<64x32xf32, #tpu.memory_space<vmem>>) attributes {dimension_semantics = [#tpu.dimension_semantics<parallel>], iteration_bounds = array<i64: 8>, scalar_prefetch = 0 : i64, scratch_operands = 0 : i64, tpu.core_type = #tpu.core_type<tc>, window_params = [{transform_indices = @transform_0, window_bounds = array<i64: 64, 32>}, {pipeline_mode = #tpu.pipeline_mode<synchronous>, transform_indices = @transform_1, window_bounds = array<i64: 32, 128>}, {pipeline_mode = #tpu.pipeline_mode<synchronous>, transform_indices = @transform_2, window_bounds = array<i64: 1, 128>}, {pipeline_mode = #tpu.pipeline_mode<synchronous>, transform_indices = @transform_3, window_bounds = array<i64: 128, 32>}, {pipeline_mode = #tpu.pipeline_mode<synchronous>, transform_indices = @transform_4, window_bounds = array<i64: 1, 32>}, {transform_indices = @transform_5, window_bounds = array<i64: 64, 32>}]} {
    %c0 = arith.constant 0 : index
    %c0_0 = arith.constant 0 : index
    %0 = vector.load %arg1[%c0, %c0_0] : memref<64x32xf32, #tpu.memory_space<vmem>>, vector<64x32xf32>
    %c0_1 = arith.constant 0 : index
    %c0_2 = arith.constant 0 : index
    %1 = vector.load %arg2[%c0_1, %c0_2] : memref<32x128xf32, #tpu.memory_space<vmem>>, vector<32x128xf32>
    %cst = arith.constant dense<0.000000e+00> : vector<64x128xf32>
    %2 = tpu.matmul %0, %1, %cst {dimension_numbers = #tpu.dot_dimension_numbers<[1], [0], [0], [1], [0, 0, 1, 1], [], []>} : vector<64x32xf32>, vector<32x128xf32>, vector<64x128xf32> -> vector<64x128xf32>
    %c0_3 = arith.constant 0 : index
    %c0_4 = arith.constant 0 : index
    %3 = vector.load %arg3[%c0_3, %c0_4] : memref<1x128xf32, #tpu.memory_space<vmem>>, vector<1x128xf32>
    %4 = vector.broadcast %3 : vector<1x128xf32> to vector<64x128xf32>
    %5 = arith.addf %2, %4 : vector<64x128xf32>
    %cst_5 = arith.constant 5.000000e-01 : f32
    %6 = vector.broadcast %cst_5 : f32 to vector<64x128xf32>
    %7 = arith.mulf %6, %5 : vector<64x128xf32>
    %cst_6 = arith.constant 0.707106769 : f32
    %8 = vector.broadcast %cst_6 : f32 to vector<64x128xf32>
    %9 = arith.mulf %5, %8 : vector<64x128xf32>
    %10 = math.erf %9 : vector<64x128xf32>
    %cst_7 = arith.constant 1.000000e+00 : f32
    %11 = vector.broadcast %cst_7 : f32 to vector<64x128xf32>
    %12 = arith.addf %11, %10 : vector<64x128xf32>
    %13 = arith.mulf %7, %12 : vector<64x128xf32>
    %c0_8 = arith.constant 0 : index
    %c0_9 = arith.constant 0 : index
    %14 = vector.load %arg4[%c0_8, %c0_9] : memref<128x32xf32, #tpu.memory_space<vmem>>, vector<128x32xf32>
    %cst_10 = arith.constant dense<0.000000e+00> : vector<64x32xf32>
    %15 = tpu.matmul %13, %14, %cst_10 {dimension_numbers = #tpu.dot_dimension_numbers<[1], [0], [0], [1], [0, 0, 1, 1], [], []>} : vector<64x128xf32>, vector<128x32xf32>, vector<64x32xf32> -> vector<64x32xf32>
    %c0_11 = arith.constant 0 : index
    %c0_12 = arith.constant 0 : index
    %16 = vector.load %arg5[%c0_11, %c0_12] : memref<1x32xf32, #tpu.memory_space<vmem>>, vector<1x32xf32>
    %17 = vector.broadcast %16 : vector<1x32xf32> to vector<64x32xf32>
    %18 = arith.addf %15, %17 : vector<64x32xf32>
    %c0_13 = arith.constant 0 : index
    %c0_14 = arith.constant 0 : index
    %19 = vector.load %arg6[%c0_13, %c0_14] : memref<64x32xf32, #tpu.memory_space<vmem>>, vector<64x32xf32>
    tpu.vector_store %arg6[%c0_13, %c0_14], %18 {strides = array<i32>} : memref<64x32xf32, #tpu.memory_space<vmem>>, vector<64x32xf32>,
    return
  }
  func.func @transform_0(%arg0: i32) -> (i32, i32) {
    %c0_i32 = arith.constant 0 : i32
    %c0_i32_0 = arith.constant 0 : i32
    return %arg0, %c0_i32 : i32, i32
  }
  func.func @transform_1(%arg0: i32) -> (i32, i32) {
    %c0_i32 = arith.constant 0 : i32
    %c0_i32_0 = arith.constant 0 : i32
    %c0_i32_1 = arith.constant 0 : i32
    return %c0_i32, %c0_i32_0 : i32, i32
  }
  func.func @transform_2(%arg0: i32) -> (i32, i32) {
    %c0_i32 = arith.constant 0 : i32
    %c0_i32_0 = arith.constant 0 : i32
    %c0_i32_1 = arith.constant 0 : i32
    return %c0_i32, %c0_i32_0 : i32, i32
  }
  func.func @transform_3(%arg0: i32) -> (i32, i32) {
    %c0_i32 = arith.constant 0 : i32
    %c0_i32_0 = arith.constant 0 : i32
    %c0_i32_1 = arith.constant 0 : i32
    return %c0_i32, %c0_i32_0 : i32, i32
  }
  func.func @transform_4(%arg0: i32) -> (i32, i32) {
    %c0_i32 = arith.constant 0 : i32
    %c0_i32_0 = arith.constant 0 : i32
    %c0_i32_1 = arith.constant 0 : i32
    return %c0_i32, %c0_i32_0 : i32, i32
  }
  func.func @transform_5(%arg0: i32) -> (i32, i32) {
    %c0_i32 = arith.constant 0 : i32
    %c0_i32_0 = arith.constant 0 : i32
    return %arg0, %c0_i32 : i32, i32
  }
}

</mosaic_0001>

<bundles_post_ra>
// kernel: _expert_forward_impl.1
= control target key start
LH: loop header
LB: loop body
LE: loop exit
PB: predicated region body
PF: predicated region fallthrough
CT: control target
= control target key end

     0   :  { %s824_s18 = smov 0   ;;  %s930_s0 = inlined_call_operand.vmem [shape: f32[512,32], index: 0, kind: input, shape index: {}]   ;;  %s931_s1 = inlined_call_operand.vmem [shape: f32[32,128], index: 1, kind: input, shape index: {}]   ;;  %s932_s2 = inlined_call_operand.vmem [shape: f32[1,128], index: 2, kind: input, shape index: {}]   ;;  %s933_s3 = inlined_call_operand.vmem [shape: f32[128,32], index: 3, kind: input, shape index: {}]   ;;  %s934_s4 = inlined_call_operand.vmem [shape: f32[1,32], index: 4, kind: input, shape index: {}]   ;;  %s935_s5 = inlined_call_operand.vmem [shape: f32[512,32], index: 5, kind: output, shape index: {}]  }
   0x1 LB: > { %s609_s19 = sadd.s32 4294967295, %s792_s18   ;;  %p613_p0 = scmp.ge.s32.totalorder %s792_s18, 1  ;;  %s792_s18 = sphi %s824_s18, %s15_s18  }
   0x2   : > { %p188_p1 = scmp.lt.s32.totalorder %s792_s18, 9 }
   0x4   : > { %p189_p2 = pnand %p613_p0, %p188_p1 }
   0x5   : > { %s614_s24 = sshll.u32 (!%p189_p2), %s609_s19, 3 }
   0x6   : > { %192 = sbr.rel (%p189_p2) target bundleno = 448 (0x1c0), region = 40  ;;  %p217_p3 = scmp.lt.s32.totalorder (!%p189_p2), %s614_s24, 63 }
   0xb   : > { %v239_v0 = vld [vmem:[%s931_s1 + $0x18] sm:$0xff]  ;;  %v238_v1 = vld [vmem:[%s931_s1 + $0x10] sm:$0xff]  ;;  %v237_v3 = vld [vmem:[%s931_s1 + $0x8] sm:$0xff]  ;;  %s937_s24 = smov (!%p217_p3, %s614_s24), 63  ;;  %vm247_vm0 = vcmask 261120  }
   0xc   : > { %666 = vmatprep.subr.mxu0 %v239_v0  ;;  %v432_v2 = vld [vmem:[%s933_s3 + $0x78] sm:$0xff]  ;;  %v431_v4 = vld [vmem:[%s933_s3 + $0x70] sm:$0xff]  ;;  %v236_v5 = vld [vmem:[%s931_s1] sm:$0xff]  ;;  %s615_s8 = sshll.u32 %s937_s24, 3 }
   0xd   : > { %667 = vmatpush3.msra.mxu0 %v239_v0  ;;  %730 = vmatprep.subr.mxu1 %v432_v2  ;;  %v430_v6 = vld [vmem:[%s933_s3 + $0x68] sm:$0xff]  ;;  %s220_s13 = scalar_lea.vmem %s930_s0, %s615_s8  ;;  %v429_v15 = vld [vmem:[%s933_s3 + $0x60] sm:$0xff]  ;;  %v428_v16 = vld [vmem:[%s933_s3 + $0x58] sm:$0xff]  ;;  %s226_s26 = scalar_lea.vmem %s935_s5, %s615_s8 }
   0xe   : > { %668 = vmatprep.subr.mxu0 %v238_v1  ;;  %746 = vmatpush3.msra.mxu1 %v432_v2  ;;  %v228_v7 = vld [vmem:[%s220_s13] sm:$0xff]  ;;  %v229_v8 = vld [vmem:[%s220_s13 + $0x8] sm:$0xff]  ;;  %v230_v9 = vld [vmem:[%s220_s13 + $0x10] sm:$0xff] }
   0xf   : > { %669 = vmatpush3.msra.mxu0 %v238_v1  ;;  %731 = vmatprep.subr.mxu1 %v431_v4  ;;  %v231_v10 = vld [vmem:[%s220_s13 + $0x18] sm:$0xff]  ;;  %v232_v11 = vld [vmem:[%s220_s13 + $0x20] sm:$0xff]  ;;  %v233_v12 = vld [vmem:[%s220_s13 + $0x28] sm:$0xff] }
  0x10   : > { %670 = vmatprep.subr.mxu0 %v237_v3  ;;  %747 = vmatpush3.msra.mxu1 %v431_v4  ;;  %v234_v13 = vld [vmem:[%s220_s13 + $0x30] sm:$0xff]  ;;  %v235_v14 = vld [vmem:[%s220_s13 + $0x38] sm:$0xff]  ;;  %v426_v18 = vld [vmem:[%s933_s3 + $0x48] sm:$0xff] }
  0x11   : > { %671 = vmatpush3.msra.mxu0 %v237_v3  ;;  %732 = vmatprep.subr.mxu1 %v430_v6  ;;  %v427_v17 = vld [vmem:[%s933_s3 + $0x50] sm:$0xff]  ;;  %v425_v19 = vld [vmem:[%s933_s3 + $0x40] sm:$0xff]  ;;  %v424_v20 = vld [vmem:[%s933_s3 + $0x38] sm:$0xff] }
  0x12   : > { %672 = vmatprep.subr.mxu0 %v236_v5  ;;  %748 = vmatpush3.msra.mxu1 %v430_v6  ;;  %v423_v21 = vld [vmem:[%s933_s3 + $0x30] sm:$0xff]  ;;  %v422_v22 = vld [vmem:[%s933_s3 + $0x28] sm:$0xff]  ;;  %v421_v23 = vld [vmem:[%s933_s3 + $0x20] sm:$0xff] }
  0x13   : > { %673 = vmatpush3.msra.mxu0 %v236_v5  ;;  %674 = vmatprep.mubr.msk.f32.mxu0 %vm247_vm0, %v228_v7  ;;  %v420_v24 = vld [vmem:[%s933_s3 + $0x18] sm:$0xff]  ;;  %v419_v25 = vld [vmem:[%s933_s3 + $0x10] sm:$0xff]  ;;  %v418_v26 = vld [vmem:[%s933_s3 + $0x8] sm:$0xff] }
  0x14   : > { %675 = vmatmul.mubr.msk.f32.vlgmr.msra.gmra.mxu0 %vm247_vm0, %v229_v8  ;;  %686 = vmatprep.subr.mxu0 %v432_v2  ;;  %v417_v27 = vld [vmem:[%s933_s3] sm:$0xff] }
  0x15   : > { %677 = vmatprep.mubr.msk.f32.mxu0 %vm247_vm0, %v230_v9  ;;  %687 = vmatpush3.msra.mxu0 %v432_v2  ;;  %v618_v28 = vld [vmem:[%s932_s2] ss:$0 sm:$0xff] }
  0x16   : > { %688 = vmatprep.subr.mxu0 %v431_v4  ;;  %733 = vmatprep.subr.mxu1 %v429_v15 }
  0x17   : > { %689 = vmatpush3.msra.mxu0 %v431_v4  ;;  %749 = vmatpush3.msra.mxu1 %v429_v15 }
  0x18   : > { %678 = vmatmul.mubr.msk.f32.gmra.mxu0 %vm247_vm0, %v231_v10  ;;  %690 = vmatprep.subr.mxu0 %v430_v6 }
  0x19   : > { %680 = vmatprep.mubr.msk.f32.mxu0 %vm247_vm0, %v232_v11  ;;  %691 = vmatpush3.msra.mxu0 %v430_v6 }
  0x1a   : > { %692 = vmatprep.subr.mxu0 %v429_v15  ;;  %734 = vmatprep.subr.mxu1 %v428_v16 }
  0x1b   : > { %693 = vmatpush3.msra.mxu0 %v429_v15  ;;  %750 = vmatpush3.msra.mxu1 %v428_v16 }
  0x1c   : > { %681 = vmatmul.mubr.msk.f32.gmra.mxu0 %vm247_vm0, %v233_v12  ;;  %694 = vmatprep.subr.mxu0 %v428_v16 }
  0x1d   : > { %683 = vmatprep.mubr.msk.f32.mxu0 %vm247_vm0, %v234_v13  ;;  %695 = vmatpush3.msra.mxu0 %v428_v16 }
  0x1e   : > { %696 = vmatprep.subr.mxu0 %v427_v17  ;;  %735 = vmatprep.subr.mxu1 %v427_v17 }
  0x1f   : > { %697 = vmatpush3.msra.mxu0 %v427_v17  ;;  %751 = vmatpush3.msra.mxu1 %v427_v17 }
  0x20   : > { %684 = vmatmul.mubr.msk.f32.gmra.mxu0 %vm247_vm0, %v235_v14  ;;  %698 = vmatprep.subr.mxu0 %v426_v18 }
  0x21   : > { %736 = vmatprep.subr.mxu1 %v426_v18  ;;  %699 = vmatpush3.msra.mxu0 %v426_v18 }
  0x22   : > { %752 = vmatpush3.msra.mxu1 %v426_v18  ;;  %700 = vmatprep.subr.mxu0 %v425_v19 }
  0x23   : > { %737 = vmatprep.subr.mxu1 %v425_v19  ;;  %701 = vmatpush3.msra.mxu0 %v425_v19 }
  0x24   : > { %753 = vmatpush3.msra.mxu1 %v425_v19  ;;  %702 = vmatprep.subr.mxu0 %v424_v20 }
  0x25   : > { %738 = vmatprep.subr.mxu1 %v424_v20  ;;  %703 = vmatpush3.msra.mxu0 %v424_v20 }
  0x26   : > { %754 = vmatpush3.msra.mxu1 %v424_v20  ;;  %704 = vmatprep.subr.mxu0 %v423_v21 }
  0x27   : > { %739 = vmatprep.subr.mxu1 %v423_v21  ;;  %705 = vmatpush3.msra.mxu0 %v423_v21 }
  0x28   : > { %755 = vmatpush3.msra.mxu1 %v423_v21  ;;  %706 = vmatprep.subr.mxu0 %v422_v22  ;;  %v627_v21 = vld [vmem:[%s934_s4] ss:$0 sm:$0xff] }
  0x29   : > { %740 = vmatprep.subr.mxu1 %v422_v22  ;;  %707 = vmatpush3.msra.mxu0 %v422_v22 }
  0x2a   : > { %756 = vmatpush3.msra.mxu1 %v422_v22  ;;  %708 = vmatprep.subr.mxu0 %v421_v23 }
  0x2b   : > { %741 = vmatprep.subr.mxu1 %v421_v23  ;;  %709 = vmatpush3.msra.mxu0 %v421_v23 }
  0x2c   : > { %757 = vmatpush3.msra.mxu1 %v421_v23  ;;  %710 = vmatprep.subr.mxu0 %v420_v24 }
  0x2d   : > { %742 = vmatprep.subr.mxu1 %v420_v24  ;;  %711 = vmatpush3.msra.mxu0 %v420_v24 }
  0x2e   : > { %758 = vmatpush3.msra.mxu1 %v420_v24  ;;  %712 = vmatprep.subr.mxu0 %v419_v25 }
  0x2f   : > { %743 = vmatprep.subr.mxu1 %v419_v25  ;;  %713 = vmatpush3.msra.mxu0 %v419_v25 }
  0x30   : > { %759 = vmatpush3.msra.mxu1 %v419_v25  ;;  %714 = vmatprep.subr.mxu0 %v418_v26 }
  0x31   : > { %744 = vmatprep.subr.mxu1 %v418_v26  ;;  %715 = vmatpush3.msra.mxu0 %v418_v26 }
  0x32   : > { %760 = vmatpush3.msra.mxu1 %v418_v26  ;;  %716 = vmatprep.subr.mxu0 %v417_v27 }
  0x33   : > { %745 = vmatprep.subr.mxu1 %v417_v27  ;;  %717 = vmatpush3.msra.mxu0 %v417_v27 }
  0x34   : > { %761 = vmatpush3.msra.mxu1 %v417_v27 }
  0xd4   : > { %v676_v29 = vpop.f32.mrf.mxu0 }
  0xd5   : > { %v344_v30 = vadd.f32 %v676_v29, %v618_v28 }
  0xd6   : > { %v338_v31 = vpop.f32.mrf.mxu0 }
  0xd7   : > { %v386_v32 = vmul.f32 0.70710677, %v344_v30  ;;  %v339_v33 = vadd.f32 %v618_v28, %v338_v31  ;;  %v378_v59 = vmul.f32 0.5, %v344_v30 }
  0xd8   : > { %v679_v34 = vpop.f32.mrf.mxu0 }
  0xd9   : > { %770 = verf.f32 %v386_v32  ;;  %v385_v35 = vmul.f32 0.70710677, %v339_v33  ;;  %v354_v36 = vadd.f32 %v679_v34, %v618_v28  ;;  %v377_v56 = vmul.f32 0.5, %v339_v33 }
  0xda   : > { %v348_v37 = vpop.f32.mrf.mxu0 }
  0xdb   : > { %772 = verf.f32 %v385_v35  ;;  %v388_v38 = vmul.f32 0.70710677, %v354_v36  ;;  %v349_v39 = vadd.f32 %v618_v28, %v348_v37  ;;  %v380_v3 = vmul.f32 0.5, %v354_v36 }
  0xdc   : > { %v682_v40 = vpop.f32.mrf.mxu0 }
  0xdd   : > { %774 = verf.f32 %v388_v38  ;;  %v387_v41 = vmul.f32 0.70710677, %v349_v39  ;;  %v364_v42 = vadd.f32 %v682_v40, %v618_v28  ;;  %v379_v0 = vmul.f32 0.5, %v349_v39 }
  0xde   : > { %v358_v43 = vpop.f32.mrf.mxu0 }
  0xdf   : > { %776 = verf.f32 %v387_v41  ;;  %v390_v44 = vmul.f32 0.70710677, %v364_v42  ;;  %v359_v45 = vadd.f32 %v618_v28, %v358_v43  ;;  %v382_v11 = vmul.f32 0.5, %v364_v42 }
  0xe0   : > { %v685_v46 = vpop.f32.mrf.mxu0 }
  0xe1   : > { %778 = verf.f32 %v390_v44  ;;  %v389_v47 = vmul.f32 0.70710677, %v359_v45  ;;  %v374_v48 = vadd.f32 %v685_v46, %v618_v28  ;;  %v381_v8 = vmul.f32 0.5, %v359_v45 }
  0xe2   : > { %v368_v49 = vpop.f32.mrf.mxu0 }
  0xe3   : > { %780 = verf.f32 %v389_v47  ;;  %v392_v50 = vmul.f32 0.70710677, %v374_v48  ;;  %v369_v51 = vadd.f32 %v618_v28, %v368_v49  ;;  %v384_v18 = vmul.f32 0.5, %v374_v48 }
  0xe5   : > { %782 = verf.f32 %v392_v50  ;;  %v391_v52 = vmul.f32 0.70710677, %v369_v51  ;;  %v383_v16 = vmul.f32 0.5, %v369_v51 }
  0xe6   : > { %v771_v53 = vpop.eup %770 }
  0xe7   : > { %784 = verf.f32 %v391_v52  ;;  %v402_v55 = vadd.f32 1.0, %v771_v53 }
  0xe8   : > { %v773_v54 = vpop.eup %772 }
  0xe9   : > { %v401_v57 = vadd.f32 1.0, %v773_v54  ;;  %v410_v62 = vmul.f32 %v402_v55, %v378_v59 }
  0xea   : > { %v775_v58 = vpop.eup %774 }
  0xeb   : > { %v409_v60 = vmul.f32 %v401_v57, %v377_v56  ;;  %v404_v63 = vadd.f32 1.0, %v775_v58 }
  0xec   : > { %v777_v61 = vpop.eup %776 }
  0xed   : > { %718 = vmatprep.mubr.f32.mxu0 %v409_v60  ;;  %v403_v1 = vadd.f32 1.0, %v777_v61  ;;  %v412_v6 = vmul.f32 %v404_v63, %v380_v3 }
  0xee   : > { %v779_v2 = vpop.eup %778  ;;  %719 = vmatmul.mubr.f32.vlgmr.msra.gmra.mxu0 %v410_v62 }
  0xef   : > { %v411_v4 = vmul.f32 %v403_v1, %v379_v0  ;;  %v406_v7 = vadd.f32 1.0, %v779_v2 }
  0xf0   : > { %v781_v5 = vpop.eup %780 }
  0xf1   : > { %721 = vmatprep.mubr.f32.mxu1 %v411_v4  ;;  %v405_v9 = vadd.f32 1.0, %v781_v5  ;;  %v414_v14 = vmul.f32 %v406_v7, %v382_v11 }
  0xf2   : > { %v783_v10 = vpop.eup %782  ;;  %722 = vmatmul.mubr.f32.vlgmr.msra.gmra.mxu1 %v412_v6 }
  0xf3   : > { %v413_v12 = vmul.f32 %v405_v9, %v381_v8  ;;  %v408_v15 = vadd.f32 1.0, %v783_v10 }
  0xf4   : > { %v785_v13 = vpop.eup %784 }
  0xf5   : > { %724 = vmatprep.mubr.f32.mxu1 %v413_v12  ;;  %v407_v17 = vadd.f32 1.0, %v785_v13  ;;  %v416_v20 = vmul.f32 %v408_v15, %v384_v18 }
  0xf6   : > { %725 = vmatmul.mubr.f32.gmra.mxu1 %v414_v14 }
  0xf7   : > { %v415_v19 = vmul.f32 %v407_v17, %v383_v16 }
  0xf9   : > { %727 = vmatprep.mubr.f32.mxu1 %v415_v19 }
  0xfa   : > { %728 = vmatmul.mubr.f32.gmra.mxu1 %v416_v20 }
 0x1ae   : > { %v720_v22 = vpop.f32.mrf.mxu0 }
 0x1af   : > { %v512_v23 = vadd.f32 %v720_v22, %v627_v21 }
 0x1b0   : > { %v506_v24 = vpop.f32.mrf.mxu0 }
 0x1b1   : > { %546 = vst.msk [vmem:[%s226_s26 + $0x8] sm:$0xff] %vm247_vm0, %v512_v23  ;;  %v507_v25 = vadd.f32 %v627_v21, %v506_v24 }
 0x1b2   : > { %v723_v26 = vpop.f32.mrf.mxu1 }
 0x1b3   : > { %545 = vst.msk [vmem:[%s226_s26] sm:$0xff] %vm247_vm0, %v507_v25  ;;  %v522_v27 = vadd.f32 %v723_v26, %v627_v21 }
 0x1b4   : > { %v516_v28 = vpop.f32.mrf.mxu1 }
 0x1b5   : > { %548 = vst.msk [vmem:[%s226_s26 + $0x18] sm:$0xff] %vm247_vm0, %v522_v27  ;;  %v517_v29 = vadd.f32 %v627_v21, %v516_v28 }
 0x1b6   : > { %v726_v30 = vpop.f32.mrf.mxu1 }
 0x1b7   : > { %547 = vst.msk [vmem:[%s226_s26 + $0x10] sm:$0xff] %vm247_vm0, %v517_v29  ;;  %v532_v31 = vadd.f32 %v726_v30, %v627_v21 }
 0x1b8   : > { %v526_v32 = vpop.f32.mrf.mxu1 }
 0x1b9   : > { %550 = vst.msk [vmem:[%s226_s26 + $0x28] sm:$0xff] %vm247_vm0, %v532_v31  ;;  %v527_v33 = vadd.f32 %v627_v21, %v526_v32 }
 0x1ba   : > { %v729_v34 = vpop.f32.mrf.mxu1 }
 0x1bb   : > { %549 = vst.msk [vmem:[%s226_s26 + $0x20] sm:$0xff] %vm247_vm0, %v527_v33  ;;  %v542_v35 = vadd.f32 %v729_v34, %v627_v21 }
 0x1bc   : > { %v536_v36 = vpop.f32.mrf.mxu1 }
 0x1bd   : > { %552 = vst.msk [vmem:[%s226_s26 + $0x38] sm:$0xff] %vm247_vm0, %v542_v35  ;;  %v537_v37 = vadd.f32 %v627_v21, %v536_v36 }
 0x1bf   : > { %551 = vst.msk [vmem:[%s226_s26 + $0x30] sm:$0xff] %vm247_vm0, %v537_v37 }
 0x1c0 PF: > { %s15_s18 = sadd.s32 1, %s792_s18  }
 0x1c1   : > { %p12_p4 = scmp.ge.s32.totalorder %s15_s18, 10  }
 0x1c3   :  { %14 = sbr.rel (!%p12_p4) target bundleno = 1 (0x1), region = 70 }

</bundles_post_ra>
